<compile_context>
chip_gen: v5e
topology: v5e:2x2
jax: 0.10.0
libtpu: 0.0.40
codegen_flags: <defaults>
</compile_context>

<pallas_src>
import jax
import jax.numpy as jnp
from jax import lax
from jax.experimental import pallas as pl
from jax.experimental.pallas import tpu as pltpu


P_HALO = 3          # max(kss) // 2 for kss = (7, 5, 3)
PER_TAP_CIN = 256   # contraction already fills MXU rows -> skip stacked operand


def _round_up(v, m):
    return (v + m - 1) // m * m


def _cdiv(a, b):
    return -(-a // b)


# ---------------------------------------------------------------------------
# Kernel
# ---------------------------------------------------------------------------
def _make_kernel(identity_shortcut, W, P, L, per_tap_cin):
    def kernel(x_ref, w1_ref, b1_ref, w2_ref, b2_ref, w3_ref, b3_ref,
               sc_w_ref, sc_b_ref, o_ref):
        M = x_ref.shape[1]                     # lanes in this block (mult. of 128)

        # Data-column mask built in-kernel (no HBM input / DMA): 1 on real
        # sequence columns, 0 on per-sequence halo / lane-alignment padding.
        col = lax.broadcasted_iota(jnp.int32, (1, M), 1) % W
        mask = jnp.logical_and(col >= P, col < P + L)

        x32 = x_ref[...].astype(jnp.float32)   # f32 working copy of the input

        def conv_bn(h32, w_ref, b_ref, relu, apply_mask):
            # h32: (Cin, M) f32; w_ref: (Cout, K*Cin) bf16 (BN scale pre-folded)
            cout, cols = w_ref.shape
            cin = h32.shape[0]
            kk = cols // cin
            p = kk // 2

            def tap(t):
                # Shifted view for tap t: column j reads h[:, j + t - p].
                # pltpu.roll = XLU lane rotate (the XLU slot has slack); the
                # wrap-around columns only touch pad columns, which are masked
                # downstream (or sliced off in the wrapper for the last conv).
                s = (p - t) % M
                ht = h32 if s == 0 else pltpu.roll(h32, s, axis=1)
                return ht.astype(jnp.bfloat16)

            if kk == 1:
                y = jnp.dot(w_ref[...], tap(0),
                            preferred_element_type=jnp.float32)
            elif cin >= per_tap_cin:
                # Contraction dim already fills the MXU rows: per-tap matmuls,
                # no (K*Cin, M) stacked temporary (saves ~K x operand VMEM).
                y = jnp.zeros((cout, M), jnp.float32)
                for t in range(kk):
                    y = y + jnp.dot(w_ref[:, t * cin:(t + 1) * cin], tap(t),
                                    preferred_element_type=jnp.float32)
            else:
                # Small channels: stack the K rolled views along sublanes and
                # issue ONE matmul with contraction K*Cin.
                stacked = jnp.concatenate([tap(t) for t in range(kk)], axis=0)
                y = jnp.dot(w_ref[...], stacked,
                            preferred_element_type=jnp.float32)

            y = y + b_ref[...]                 # folded-BN per-channel shift
            if relu and apply_mask:            # ReLU + pad-mask fused in one select
                y = jnp.where(mask, jnp.maximum(y, 0.0), 0.0)
            elif relu:
                y = jnp.maximum(y, 0.0)
            elif apply_mask:
                y = jnp.where(mask, y, 0.0)
            return y

        h = conv_bn(x32, w1_ref, b1_ref, relu=True, apply_mask=True)
        h = conv_bn(h, w2_ref, b2_ref, relu=True, apply_mask=True)
        h = conv_bn(h, w3_ref, b3_ref, relu=False, apply_mask=False)

        if identity_shortcut:
            # shortcut = BN1d(x): pure VPU, no wasted identity matmul.
            sc = x32 * sc_w_ref[...] + sc_b_ref[...]
        else:
            # shortcut = 1x1 ConvBlock (BN scale folded into the weight).
            sc = jnp.dot(sc_w_ref[...], x_ref[...],
                         preferred_element_type=jnp.float32) + sc_b_ref[...]

        o_ref[...] = jnp.maximum(h + sc, 0.0).astype(o_ref.dtype)

    return kernel


# ---------------------------------------------------------------------------
# Per-block VMEM footprint estimate (blocks + in-kernel temporaries + weights)
# ---------------------------------------------------------------------------
def _block_vmem_bytes(ni, nf, M, identity_sc, per_tap_cin):
    b = ni * M * 2 * 2                  # bf16 activation block, double-buffered
    b += nf * M * 4 * 2                 # f32 output block, double-buffered
    b += ni * M * 4                     # f32 copy of x
    stack = 0
    if ni < per_tap_cin:
        stack = max(stack, 7 * ni * M * 2)
    if nf < per_tap_cin:
        stack = max(stack, 5 * nf * M * 2)
    b += stack                          # largest stacked bf16 operand (if any)
    b += 3 * nf * M * 4                 # live f32 result tiles (headroom)
    w = (7 * ni + 5 * nf + 3 * nf) * nf * 2 + 3 * nf * 4
    if identity_sc:
        w += 2 * ni * 4
    else:
        w += nf * ni * 2 + nf * 4
    b += 2 * w                          # conservative: consts double-buffered
    return b


# ---------------------------------------------------------------------------
# Wrapper: layout transform + pallas_call plumbing
# ---------------------------------------------------------------------------
def resblock_pallas(x, params, *, out_dtype=jnp.float32,
                    per_tap_cin=PER_TAP_CIN):
    N, ni, L = x.shape
    nf = params["w1"].shape[1]
    identity_sc = "wsc" not in params      # BN-only shortcut iff ni == nf
    P = P_HALO
    W = _round_up(L + 2 * P, 128)          # per-sequence width, lane aligned

    # ---- generation-aware VMEM budget (v5e/v6e: 128 MiB, v7x: 64 MiB) ----
    vmem_cap = 64 * 1024 * 1024            # conservative default
    try:
        vmem_cap = int(pltpu.get_tpu_info().vmem_capacity_bytes)
    except Exception:
        pass
    if vmem_cap >= 100 * 1024 * 1024:      # v5e / v6e class (128 MiB VMEM)
        vmem_limit, lane_cap = 100 * 1024 * 1024, 8192
    else:                                  # v7x class (64 MiB VMEM per TC)
        vmem_limit, lane_cap = 48 * 1024 * 1024, 2048
    budget = int(vmem_limit * 0.8)         # headroom for compiler scratch

    # ---- batch-group size: lane-dense blocks, >=4 grid steps when N allows ----
    min_steps = 4                          # keep both v7x TCs fed + DMA overlap
    nb = min(N, max(1, lane_cap // W), max(1, _cdiv(N, min_steps)))
    while nb > 1 and _block_vmem_bytes(ni, nf, nb * W, identity_sc,
                                       per_tap_cin) > budget:
        nb -= 1
    M_blk = nb * W
    n_steps = _cdiv(N, nb)                 # cdiv grid: no divisor search
    N_pad = n_steps * nb                   # batch padded up to a multiple of nb

    # ---- activations: (N, ni, L) -> (ni, N_pad*W) bf16, zero-padded once ----
    xt = jnp.transpose(x, (1, 0, 2))                                  # (ni, N, L)
    xp = jnp.pad(xt, ((0, 0), (0, N_pad - N), (P, W - L - P)))        # (ni, N_pad, W)
    x_flat = xp.reshape(ni, N_pad * W).astype(jnp.bfloat16)
    # TODO(synk): when stacking several ResBlocks, keep this (C, N*W) bf16
    # layout as the persistent inter-layer format to avoid the NCL <-> lane-flat
    # round trips (dominant extra HBM traffic on v5e).

    # ---- fold BN scale into conv weights; fuse taps -> (Cout, K*Cin) bf16 ----
    def fuse(w_taps, scale):
        K, Co, Ci = w_taps.shape
        wf = (w_taps * scale.reshape(1, Co, 1)).transpose(1, 0, 2).reshape(Co, K * Ci)
        return wf.astype(jnp.bfloat16)

    w1 = fuse(params["w1"], params["s1"]); b1 = params["b1"]
    w2 = fuse(params["w2"], params["s2"]); b2 = params["b2"]
    w3 = fuse(params["w3"], params["s3"]); b3 = params["b3"]
    if identity_sc:
        sc_w, sc_b = params["ssc"], params["bsc"]                     # (ni,1) f32
    else:
        sc_w, sc_b = fuse(params["wsc"], params["ssc"]), params["bsc"]
    consts = [w1, b1, w2, b2, w3, b3, sc_w, sc_b]

    # ---- advisory cost: lets XLA overlap wrapper layout ops with the kernel ----
    flops = 2 * N_pad * W * nf * (7 * ni + 5 * nf + 3 * nf)
    if not identity_sc:
        flops += 2 * N_pad * W * nf * ni
    bytes_accessed = (x_flat.size * 2
                      + nf * N_pad * W * jnp.dtype(out_dtype).itemsize
                      + sum(int(c.size) * c.dtype.itemsize for c in consts))
    cost = pl.CostEstimate(flops=int(flops), transcendentals=0,
                           bytes_accessed=int(bytes_accessed))

    kernel = _make_kernel(identity_sc, W, P, L, per_tap_cin)

    def run(single_buffer_consts):
        def const_spec(a):
            nd = a.ndim
            kw = {}
            if single_buffer_consts:
                # Constant index_map -> one resident copy is enough; frees VMEM
                # (most valuable on v7x's 64 MiB).
                kw["pipeline_mode"] = pl.Buffered(1)
            return pl.BlockSpec(a.shape, lambda i, _nd=nd: (0,) * _nd, **kw)

        in_specs = [pl.BlockSpec((ni, M_blk), lambda i: (0, i))]      # activations
        in_specs += [const_spec(c) for c in consts]

        out = pl.pallas_call(
            kernel,
            out_shape=jax.ShapeDtypeStruct((nf, N_pad * W), out_dtype),
            grid_spec=pltpu.PrefetchScalarGridSpec(
                num_scalar_prefetch=0,
                grid=(n_steps,),
                in_specs=in_specs,
                out_specs=pl.BlockSpec((nf, M_blk), lambda i: (0, i)),
            ),
            compiler_params=pltpu.CompilerParams(
                dimension_semantics=("parallel",),
                vmem_limit_bytes=vmem_limit,
            ),
            cost_estimate=cost,
        )(x_flat, *consts)
        return jax.block_until_ready(out)

    try:
        out_flat = run(True)
    except Exception:
        # pl.Buffered(1) rejected by this jax/libtpu: fall back to default
        # (double-buffered) constant operands.
        out_flat = run(False)

    out = out_flat.reshape(nf, N_pad, W)[:, :N, P:P + L]
    return jnp.transpose(out, (1, 0, 2))                              # (N, nf, L)


# ---------------------------------------------------------------------------
# Deterministic parameter construction (synthetic; BN folded for inference)
# ---------------------------------------------------------------------------
def _fold_bn(key, c, eps=1e-5):
    kg, kb, km, kv = jax.random.split(key, 4)
    gamma = 1.0 + 0.1 * jax.random.normal(kg, (c,), jnp.float32)
    beta = 0.1 * jax.random.normal(kb, (c,), jnp.float32)
    mean = 0.1 * jax.random.normal(km, (c,), jnp.float32)
    var = jnp.abs(jax.random.normal(kv, (c,), jnp.float32)) + 0.5
    scale = gamma / jnp.sqrt(var + eps)
    shift = beta - mean * scale
    return scale.reshape(c, 1), shift.reshape(c, 1)


def make_params(key, ni, nf, kss=(7, 5, 3)):
    ks = jax.random.split(key, 8)
    p = {}
    # conv weights stored per-tap as (K, Cout, Cin)
    p["w1"] = 0.1 * jax.random.normal(ks[0], (kss[0], nf, ni), jnp.float32)
    p["w2"] = 0.1 * jax.random.normal(ks[1], (kss[1], nf, nf), jnp.float32)
    p["w3"] = 0.1 * jax.random.normal(ks[2], (kss[2], nf, nf), jnp.float32)
    p["s1"], p["b1"] = _fold_bn(ks[3], nf)
    p["s2"], p["b2"] = _fold_bn(ks[4], nf)
    p["s3"], p["b3"] = _fold_bn(ks[5], nf)
    if ni != nf:
        # shortcut = ConvBlock(ni, nf, 1, act=None)
        p["wsc"] = 0.1 * jax.random.normal(ks[6], (1, nf, ni), jnp.float32)
        p["ssc"], p["bsc"] = _fold_bn(ks[7], nf)
    else:
        # shortcut = BN1d(ni)
        p["ssc"], p["bsc"] = _fold_bn(ks[7], ni)
    return p


# ---------------------------------------------------------------------------
# Plain-JAX f32 reference (for correctness check)
# ---------------------------------------------------------------------------
def _conv_bn_ref(x, w_taps, scale, shift, relu):
    K = w_taps.shape[0]
    w = jnp.transpose(w_taps, (1, 2, 0))                 # (Cout, Cin, K)
    y = lax.conv_general_dilated(x, w, window_strides=(1,),
                                 padding=[(K // 2, K // 2)],
                                 dimension_numbers=("NCH", "OIH", "NCH"))
    y = y * scale[None] + shift[None]
    if relu:
        y = jnp.maximum(y, 0.0)
    return y


def resblock_ref(x, p):
    h = _conv_bn_ref(x, p["w1"], p["s1"], p["b1"], True)
    h = _conv_bn_ref(h, p["w2"], p["s2"], p["b2"], True)
    h = _conv_bn_ref(h, p["w3"], p["s3"], p["b3"], False)
    if "wsc" in p:
        sc = _conv_bn_ref(x, p["wsc"], p["ssc"], p["bsc"], False)
    else:
        sc = x * p["ssc"][None] + p["bsc"][None]
    return jnp.maximum(h + sc, 0.0)


if __name__ == "__main__":
    key = jax.random.PRNGKey(0)
    k1, k2, k3, k4 = jax.random.split(key, 4)

    # Case 1: ni != nf  -> 1x1-conv shortcut (matmul path in kernel)
    N, ni, nf, L = 2, 4, 8, 16
    x = jax.random.normal(k1, (N, ni, L), jnp.float32)
    params = make_params(k2, ni, nf)
    out = jax.block_until_ready(resblock_pallas(x, params))
    ref = resblock_ref(x, params)
    assert out.shape == (N, nf, L)
    # bf16 matmul operands + bf16 intermediates -> relaxed tolerance vs f32 ref
    assert jnp.allclose(out, ref, rtol=2e-2, atol=2e-2), "mismatch (conv shortcut)"

    # Case 2: ni == nf  -> BN-only shortcut (no shortcut matmul in kernel)
    ni2 = nf2 = 8
    x2 = jax.random.normal(k3, (N, ni2, L), jnp.float32)
    params2 = make_params(k4, ni2, nf2)
    out2 = jax.block_until_ready(resblock_pallas(x2, params2))
    ref2 = resblock_ref(x2, params2)
    assert out2.shape == (N, nf2, L)
    assert jnp.allclose(out2, ref2, rtol=2e-2, atol=2e-2), "mismatch (BN shortcut)"

    print("KERNEL_OK")
</pallas_src>

<mosaic_0001>
module attributes {stable_mosaic.version = 11 : i64} {
  func.func @kernel(%arg0: i32, %arg1: memref<4x128xbf16, #tpu.memory_space<vmem>>, %arg2: memref<8x28xbf16, #tpu.memory_space<vmem>>, %arg3: memref<8x1xf32, #tpu.memory_space<vmem>>, %arg4: memref<8x40xbf16, #tpu.memory_space<vmem>>, %arg5: memref<8x1xf32, #tpu.memory_space<vmem>>, %arg6: memref<8x24xbf16, #tpu.memory_space<vmem>>, %arg7: memref<8x1xf32, #tpu.memory_space<vmem>>, %arg8: memref<8x4xbf16, #tpu.memory_space<vmem>>, %arg9: memref<8x1xf32, #tpu.memory_space<vmem>>, %arg10: memref<8x128xf32, #tpu.memory_space<vmem>>) attributes {dimension_semantics = [#tpu.dimension_semantics<parallel>], iteration_bounds = array<i64: 2>, scalar_prefetch = 0 : i64, scratch_operands = 0 : i64, tpu.core_type = #tpu.core_type<tc>, window_params = [{transform_indices = @transform_0, window_bounds = array<i64: 4, 128>}, {pipeline_mode = #tpu.pipeline_mode<synchronous>, transform_indices = @transform_1, window_bounds = array<i64: 8, 28>}, {pipeline_mode = #tpu.pipeline_mode<synchronous>, transform_indices = @transform_2, window_bounds = array<i64: 8, 1>}, {pipeline_mode = #tpu.pipeline_mode<synchronous>, transform_indices = @transform_3, window_bounds = array<i64: 8, 40>}, {pipeline_mode = #tpu.pipeline_mode<synchronous>, transform_indices = @transform_4, window_bounds = array<i64: 8, 1>}, {pipeline_mode = #tpu.pipeline_mode<synchronous>, transform_indices = @transform_5, window_bounds = array<i64: 8, 24>}, {pipeline_mode = #tpu.pipeline_mode<synchronous>, transform_indices = @transform_6, window_bounds = array<i64: 8, 1>}, {pipeline_mode = #tpu.pipeline_mode<synchronous>, transform_indices = @transform_7, window_bounds = array<i64: 8, 4>}, {pipeline_mode = #tpu.pipeline_mode<synchronous>, transform_indices = @transform_8, window_bounds = array<i64: 8, 1>}, {transform_indices = @transform_9, window_bounds = array<i64: 8, 128>}]} {
    %0 = tpu.iota {dimensions = array<i32: 1>} : vector<1x128xi32>
    %c128_i32 = arith.constant 128 : i32
    %c0_i32 = arith.constant 0 : i32
    %1 = arith.cmpi eq, %c128_i32, %c0_i32 : i32
    %c1_i32 = arith.constant 1 : i32
    %2 = arith.select %1, %c1_i32, %c128_i32 : i32
    %3 = vector.broadcast %2 : i32 to vector<1x128xi32>
    %4 = arith.remsi %0, %3 : vector<1x128xi32>
    %c0_i32_0 = arith.constant 0 : i32
    %5 = vector.broadcast %c0_i32_0 : i32 to vector<1x128xi32>
    %6 = arith.cmpi ne, %4, %5 : vector<1x128xi32>
    %c0_i32_1 = arith.constant 0 : i32
    %7 = vector.broadcast %c0_i32_1 : i32 to vector<1x128xi32>
    %8 = arith.cmpi slt, %4, %7 : vector<1x128xi32>
    %c0_i32_2 = arith.constant 0 : i32
    %9 = arith.cmpi slt, %2, %c0_i32_2 : i32
    %10 = vector.broadcast %9 : i1 to vector<1x128xi1>
    %11 = vector.broadcast %10 : vector<1x128xi1> to vector<1x128xi1>
    %12 = arith.xori %8, %11 : vector<1x128xi1>
    %13 = arith.andi %12, %6 : vector<1x128xi1>
    %14 = vector.broadcast %2 : i32 to vector<1x128xi32>
    %15 = arith.addi %4, %14 : vector<1x128xi32>
    %16 = arith.select %13, %15, %4 : vector<1x128xi1>, vector<1x128xi32>
    %c3_i32 = arith.constant 3 : i32
    %17 = vector.broadcast %c3_i32 : i32 to vector<1x128xi32>
    %18 = arith.cmpi sge, %16, %17 : vector<1x128xi32>
    %c19_i32 = arith.constant 19 : i32
    %19 = vector.broadcast %c19_i32 : i32 to vector<1x128xi32>
    %20 = arith.cmpi slt, %16, %19 : vector<1x128xi32>
    %21 = arith.andi %18, %20 : vector<1x128xi1>
    %c0 = arith.constant 0 : index
    %c0_3 = arith.constant 0 : index
    %22 = vector.load %arg1[%c0, %c0_3] : memref<4x128xbf16, #tpu.memory_space<vmem>>, vector<4x128xbf16>
    %23 = arith.extf %22 : vector<4x128xbf16> to vector<4x128xf32>
    %c3_i32_4 = arith.constant 3 : i32
    %24 = tpu.dynamic_rotate %23 by %c3_i32_4 dim 1 : vector<4x128xf32>, i32 -> vector<4x128xf32>
    %25 = arith.truncf %24 : vector<4x128xf32> to vector<4x128xbf16>
    %c2_i32 = arith.constant 2 : i32
    %26 = tpu.dynamic_rotate %23 by %c2_i32 dim 1 : vector<4x128xf32>, i32 -> vector<4x128xf32>
    %27 = arith.truncf %26 : vector<4x128xf32> to vector<4x128xbf16>
    %c1_i32_5 = arith.constant 1 : i32
    %28 = tpu.dynamic_rotate %23 by %c1_i32_5 dim 1 : vector<4x128xf32>, i32 -> vector<4x128xf32>
    %29 = arith.truncf %28 : vector<4x128xf32> to vector<4x128xbf16>
    %30 = arith.truncf %23 : vector<4x128xf32> to vector<4x128xbf16>
    %c127_i32 = arith.constant 127 : i32
    %31 = tpu.dynamic_rotate %23 by %c127_i32 dim 1 : vector<4x128xf32>, i32 -> vector<4x128xf32>
    %32 = arith.truncf %31 : vector<4x128xf32> to vector<4x128xbf16>
    %c126_i32 = arith.constant 126 : i32
    %33 = tpu.dynamic_rotate %23 by %c126_i32 dim 1 : vector<4x128xf32>, i32 -> vector<4x128xf32>
    %34 = arith.truncf %33 : vector<4x128xf32> to vector<4x128xbf16>
    %c125_i32 = arith.constant 125 : i32
    %35 = tpu.dynamic_rotate %23 by %c125_i32 dim 1 : vector<4x128xf32>, i32 -> vector<4x128xf32>
    %36 = arith.truncf %35 : vector<4x128xf32> to vector<4x128xbf16>
    %37 = tpu.concatenate %25, %27, %29, %30, %32, %34, %36 in 0 : vector<4x128xbf16>, vector<4x128xbf16>, vector<4x128xbf16>, vector<4x128xbf16>, vector<4x128xbf16>, vector<4x128xbf16>, vector<4x128xbf16> -> vector<28x128xbf16>
    %c0_6 = arith.constant 0 : index
    %c0_7 = arith.constant 0 : index
    %38 = vector.load %arg2[%c0_6, %c0_7] : memref<8x28xbf16, #tpu.memory_space<vmem>>, vector<8x28xbf16>
    %cst = arith.constant dense<0.000000e+00> : vector<8x128xf32>
    %39 = tpu.matmul %38, %37, %cst {dimension_numbers = #tpu.dot_dimension_numbers<[1], [0], [0], [1], [0, 0, 1, 1], [], []>} : vector<8x28xbf16>, vector<28x128xbf16>, vector<8x128xf32> -> vector<8x128xf32>
    %c0_8 = arith.constant 0 : index
    %c0_9 = arith.constant 0 : index
    %40 = vector.load %arg3[%c0_8, %c0_9] : memref<8x1xf32, #tpu.memory_space<vmem>>, vector<8x1xf32>
    %41 = vector.broadcast %40 : vector<8x1xf32> to vector<8x128xf32>
    %42 = arith.addf %39, %41 : vector<8x128xf32>
    %cst_10 = arith.constant 0.000000e+00 : f32
    %43 = vector.broadcast %cst_10 : f32 to vector<8x128xf32>
    %44 = arith.maximumf %42, %43 : vector<8x128xf32>
    %cst_11 = arith.constant 0.000000e+00 : f32
    %45 = vector.shape_cast %21 : vector<1x128xi1> to vector<1x128xi1>
    %46 = vector.broadcast %45 : vector<1x128xi1> to vector<8x128xi1>
    %47 = vector.broadcast %cst_11 : f32 to vector<8x128xf32>
    %48 = arith.select %46, %44, %47 : vector<8x128xi1>, vector<8x128xf32>
    %c2_i32_12 = arith.constant 2 : i32
    %49 = tpu.dynamic_rotate %48 by %c2_i32_12 dim 1 : vector<8x128xf32>, i32 -> vector<8x128xf32>
    %50 = arith.truncf %49 : vector<8x128xf32> to vector<8x128xbf16>
    %c1_i32_13 = arith.constant 1 : i32
    %51 = tpu.dynamic_rotate %48 by %c1_i32_13 dim 1 : vector<8x128xf32>, i32 -> vector<8x128xf32>
    %52 = arith.truncf %51 : vector<8x128xf32> to vector<8x128xbf16>
    %53 = arith.truncf %48 : vector<8x128xf32> to vector<8x128xbf16>
    %c127_i32_14 = arith.constant 127 : i32
    %54 = tpu.dynamic_rotate %48 by %c127_i32_14 dim 1 : vector<8x128xf32>, i32 -> vector<8x128xf32>
    %55 = arith.truncf %54 : vector<8x128xf32> to vector<8x128xbf16>
    %c126_i32_15 = arith.constant 126 : i32
    %56 = tpu.dynamic_rotate %48 by %c126_i32_15 dim 1 : vector<8x128xf32>, i32 -> vector<8x128xf32>
    %57 = arith.truncf %56 : vector<8x128xf32> to vector<8x128xbf16>
    %58 = tpu.concatenate %50, %52, %53, %55, %57 in 0 : vector<8x128xbf16>, vector<8x128xbf16>, vector<8x128xbf16>, vector<8x128xbf16>, vector<8x128xbf16> -> vector<40x128xbf16>
    %c0_16 = arith.constant 0 : index
    %c0_17 = arith.constant 0 : index
    %59 = vector.load %arg4[%c0_16, %c0_17] : memref<8x40xbf16, #tpu.memory_space<vmem>>, vector<8x40xbf16>
    %cst_18 = arith.constant dense<0.000000e+00> : vector<8x128xf32>
    %60 = tpu.matmul %59, %58, %cst_18 {dimension_numbers = #tpu.dot_dimension_numbers<[1], [0], [0], [1], [0, 0, 1, 1], [], []>} : vector<8x40xbf16>, vector<40x128xbf16>, vector<8x128xf32> -> vector<8x128xf32>
    %c0_19 = arith.constant 0 : index
    %c0_20 = arith.constant 0 : index
    %61 = vector.load %arg5[%c0_19, %c0_20] : memref<8x1xf32, #tpu.memory_space<vmem>>, vector<8x1xf32>
    %62 = vector.broadcast %61 : vector<8x1xf32> to vector<8x128xf32>
    %63 = arith.addf %60, %62 : vector<8x128xf32>
    %cst_21 = arith.constant 0.000000e+00 : f32
    %64 = vector.broadcast %cst_21 : f32 to vector<8x128xf32>
    %65 = arith.maximumf %63, %64 : vector<8x128xf32>
    %cst_22 = arith.constant 0.000000e+00 : f32
    %66 = vector.shape_cast %21 : vector<1x128xi1> to vector<1x128xi1>
    %67 = vector.broadcast %66 : vector<1x128xi1> to vector<8x128xi1>
    %68 = vector.broadcast %cst_22 : f32 to vector<8x128xf32>
    %69 = arith.select %67, %65, %68 : vector<8x128xi1>, vector<8x128xf32>
    %c1_i32_23 = arith.constant 1 : i32
    %70 = tpu.dynamic_rotate %69 by %c1_i32_23 dim 1 : vector<8x128xf32>, i32 -> vector<8x128xf32>
    %71 = arith.truncf %70 : vector<8x128xf32> to vector<8x128xbf16>
    %72 = arith.truncf %69 : vector<8x128xf32> to vector<8x128xbf16>
    %c127_i32_24 = arith.constant 127 : i32
    %73 = tpu.dynamic_rotate %69 by %c127_i32_24 dim 1 : vector<8x128xf32>, i32 -> vector<8x128xf32>
    %74 = arith.truncf %73 : vector<8x128xf32> to vector<8x128xbf16>
    %75 = tpu.concatenate %71, %72, %74 in 0 : vector<8x128xbf16>, vector<8x128xbf16>, vector<8x128xbf16> -> vector<24x128xbf16>
    %c0_25 = arith.constant 0 : index
    %c0_26 = arith.constant 0 : index
    %76 = vector.load %arg6[%c0_25, %c0_26] : memref<8x24xbf16, #tpu.memory_space<vmem>>, vector<8x24xbf16>
    %cst_27 = arith.constant dense<0.000000e+00> : vector<8x128xf32>
    %77 = tpu.matmul %76, %75, %cst_27 {dimension_numbers = #tpu.dot_dimension_numbers<[1], [0], [0], [1], [0, 0, 1, 1], [], []>} : vector<8x24xbf16>, vector<24x128xbf16>, vector<8x128xf32> -> vector<8x128xf32>
    %c0_28 = arith.constant 0 : index
    %c0_29 = arith.constant 0 : index
    %78 = vector.load %arg7[%c0_28, %c0_29] : memref<8x1xf32, #tpu.memory_space<vmem>>, vector<8x1xf32>
    %79 = vector.broadcast %78 : vector<8x1xf32> to vector<8x128xf32>
    %80 = arith.addf %77, %79 : vector<8x128xf32>
    %c0_30 = arith.constant 0 : index
    %c0_31 = arith.constant 0 : index
    %81 = vector.load %arg8[%c0_30, %c0_31] : memref<8x4xbf16, #tpu.memory_space<vmem>>, vector<8x4xbf16>
    %c0_32 = arith.constant 0 : index
    %c0_33 = arith.constant 0 : index
    %82 = vector.load %arg1[%c0_32, %c0_33] : memref<4x128xbf16, #tpu.memory_space<vmem>>, vector<4x128xbf16>
    %cst_34 = arith.constant dense<0.000000e+00> : vector<8x128xf32>
    %83 = tpu.matmul %81, %82, %cst_34 {dimension_numbers = #tpu.dot_dimension_numbers<[1], [0], [0], [1], [0, 0, 1, 1], [], []>} : vector<8x4xbf16>, vector<4x128xbf16>, vector<8x128xf32> -> vector<8x128xf32>
    %c0_35 = arith.constant 0 : index
    %c0_36 = arith.constant 0 : index
    %84 = vector.load %arg9[%c0_35, %c0_36] : memref<8x1xf32, #tpu.memory_space<vmem>>, vector<8x1xf32>
    %85 = vector.broadcast %84 : vector<8x1xf32> to vector<8x128xf32>
    %86 = arith.addf %83, %85 : vector<8x128xf32>
    %87 = arith.addf %80, %86 : vector<8x128xf32>
    %cst_37 = arith.constant 0.000000e+00 : f32
    %88 = vector.broadcast %cst_37 : f32 to vector<8x128xf32>
    %89 = arith.maximumf %87, %88 : vector<8x128xf32>
    %c0_38 = arith.constant 0 : index
    %c0_39 = arith.constant 0 : index
    %90 = vector.load %arg10[%c0_38, %c0_39] : memref<8x128xf32, #tpu.memory_space<vmem>>, vector<8x128xf32>
    tpu.vector_store %arg10[%c0_38, %c0_39], %89 {strides = array<i32>} : memref<8x128xf32, #tpu.memory_space<vmem>>, vector<8x128xf32>,
    return
  }
  func.func @transform_0(%arg0: i32) -> (i32, i32) {
    %c0_i32 = arith.constant 0 : i32
    %c0_i32_0 = arith.constant 0 : i32
    return %c0_i32, %arg0 : i32, i32
  }
  func.func @transform_1(%arg0: i32) -> (i32, i32) {
    %c0_i32 = arith.constant 0 : i32
    %c0_i32_0 = arith.constant 0 : i32
    %c0_i32_1 = arith.constant 0 : i32
    return %c0_i32, %c0_i32_0 : i32, i32
  }
  func.func @transform_2(%arg0: i32) -> (i32, i32) {
    %c0_i32 = arith.constant 0 : i32
    %c0_i32_0 = arith.constant 0 : i32
    %c0_i32_1 = arith.constant 0 : i32
    return %c0_i32, %c0_i32_0 : i32, i32
  }
  func.func @transform_3(%arg0: i32) -> (i32, i32) {
    %c0_i32 = arith.constant 0 : i32
    %c0_i32_0 = arith.constant 0 : i32
    %c0_i32_1 = arith.constant 0 : i32
    return %c0_i32, %c0_i32_0 : i32, i32
  }
  func.func @transform_4(%arg0: i32) -> (i32, i32) {
    %c0_i32 = arith.constant 0 : i32
    %c0_i32_0 = arith.constant 0 : i32
    %c0_i32_1 = arith.constant 0 : i32
    return %c0_i32, %c0_i32_0 : i32, i32
  }
  func.func @transform_5(%arg0: i32) -> (i32, i32) {
    %c0_i32 = arith.constant 0 : i32
    %c0_i32_0 = arith.constant 0 : i32
    %c0_i32_1 = arith.constant 0 : i32
    return %c0_i32, %c0_i32_0 : i32, i32
  }
  func.func @transform_6(%arg0: i32) -> (i32, i32) {
    %c0_i32 = arith.constant 0 : i32
    %c0_i32_0 = arith.constant 0 : i32
    %c0_i32_1 = arith.constant 0 : i32
    return %c0_i32, %c0_i32_0 : i32, i32
  }
  func.func @transform_7(%arg0: i32) -> (i32, i32) {
    %c0_i32 = arith.constant 0 : i32
    %c0_i32_0 = arith.constant 0 : i32
    %c0_i32_1 = arith.constant 0 : i32
    return %c0_i32, %c0_i32_0 : i32, i32
  }
  func.func @transform_8(%arg0: i32) -> (i32, i32) {
    %c0_i32 = arith.constant 0 : i32
    %c0_i32_0 = arith.constant 0 : i32
    %c0_i32_1 = arith.constant 0 : i32
    return %c0_i32, %c0_i32_0 : i32, i32
  }
  func.func @transform_9(%arg0: i32) -> (i32, i32) {
    %c0_i32 = arith.constant 0 : i32
    %c0_i32_0 = arith.constant 0 : i32
    return %c0_i32, %arg0 : i32, i32
  }
}

module attributes {stable_mosaic.version = 11 : i64} {
  func.func @kernel(%arg0: i32, %arg1: memref<4x128xbf16, #tpu.memory_space<vmem>>, %arg2: memref<8x28xbf16, #tpu.memory_space<vmem>>, %arg3: memref<8x1xf32, #tpu.memory_space<vmem>>, %arg4: memref<8x40xbf16, #tpu.memory_space<vmem>>, %arg5: memref<8x1xf32, #tpu.memory_space<vmem>>, %arg6: memref<8x24xbf16, #tpu.memory_space<vmem>>, %arg7: memref<8x1xf32, #tpu.memory_space<vmem>>, %arg8: memref<8x4xbf16, #tpu.memory_space<vmem>>, %arg9: memref<8x1xf32, #tpu.memory_space<vmem>>, %arg10: memref<8x128xf32, #tpu.memory_space<vmem>>) attributes {dimension_semantics = [#tpu.dimension_semantics<parallel>], iteration_bounds = array<i64: 2>, scalar_prefetch = 0 : i64, scratch_operands = 0 : i64, tpu.core_type = #tpu.core_type<tc>, window_params = [{transform_indices = @transform_0, window_bounds = array<i64: 4, 128>}, {pipeline_mode = #tpu.pipeline_mode<synchronous>, transform_indices = @transform_1, window_bounds = array<i64: 8, 28>}, {pipeline_mode = #tpu.pipeline_mode<synchronous>, transform_indices = @transform_2, window_bounds = array<i64: 8, 1>}, {pipeline_mode = #tpu.pipeline_mode<synchronous>, transform_indices = @transform_3, window_bounds = array<i64: 8, 40>}, {pipeline_mode = #tpu.pipeline_mode<synchronous>, transform_indices = @transform_4, window_bounds = array<i64: 8, 1>}, {pipeline_mode = #tpu.pipeline_mode<synchronous>, transform_indices = @transform_5, window_bounds = array<i64: 8, 24>}, {pipeline_mode = #tpu.pipeline_mode<synchronous>, transform_indices = @transform_6, window_bounds = array<i64: 8, 1>}, {pipeline_mode = #tpu.pipeline_mode<synchronous>, transform_indices = @transform_7, window_bounds = array<i64: 8, 4>}, {pipeline_mode = #tpu.pipeline_mode<synchronous>, transform_indices = @transform_8, window_bounds = array<i64: 8, 1>}, {transform_indices = @transform_9, window_bounds = array<i64: 8, 128>}]} {
    %0 = tpu.iota {dimensions = array<i32: 1>} : vector<1x128xi32>
    %c128_i32 = arith.constant 128 : i32
    %c0_i32 = arith.constant 0 : i32
    %1 = arith.cmpi eq, %c128_i32, %c0_i32 : i32
    %c1_i32 = arith.constant 1 : i32
    %2 = arith.select %1, %c1_i32, %c128_i32 : i32
    %3 = vector.broadcast %2 : i32 to vector<1x128xi32>
    %4 = arith.remsi %0, %3 : vector<1x128xi32>
    %c0_i32_0 = arith.constant 0 : i32
    %5 = vector.broadcast %c0_i32_0 : i32 to vector<1x128xi32>
    %6 = arith.cmpi ne, %4, %5 : vector<1x128xi32>
    %c0_i32_1 = arith.constant 0 : i32
    %7 = vector.broadcast %c0_i32_1 : i32 to vector<1x128xi32>
    %8 = arith.cmpi slt, %4, %7 : vector<1x128xi32>
    %c0_i32_2 = arith.constant 0 : i32
    %9 = arith.cmpi slt, %2, %c0_i32_2 : i32
    %10 = vector.broadcast %9 : i1 to vector<1x128xi1>
    %11 = vector.broadcast %10 : vector<1x128xi1> to vector<1x128xi1>
    %12 = arith.xori %8, %11 : vector<1x128xi1>
    %13 = arith.andi %12, %6 : vector<1x128xi1>
    %14 = vector.broadcast %2 : i32 to vector<1x128xi32>
    %15 = arith.addi %4, %14 : vector<1x128xi32>
    %16 = arith.select %13, %15, %4 : vector<1x128xi1>, vector<1x128xi32>
    %c3_i32 = arith.constant 3 : i32
    %17 = vector.broadcast %c3_i32 : i32 to vector<1x128xi32>
    %18 = arith.cmpi sge, %16, %17 : vector<1x128xi32>
    %c19_i32 = arith.constant 19 : i32
    %19 = vector.broadcast %c19_i32 : i32 to vector<1x128xi32>
    %20 = arith.cmpi slt, %16, %19 : vector<1x128xi32>
    %21 = arith.andi %18, %20 : vector<1x128xi1>
    %c0 = arith.constant 0 : index
    %c0_3 = arith.constant 0 : index
    %22 = vector.load %arg1[%c0, %c0_3] : memref<4x128xbf16, #tpu.memory_space<vmem>>, vector<4x128xbf16>
    %23 = arith.extf %22 : vector<4x128xbf16> to vector<4x128xf32>
    %c3_i32_4 = arith.constant 3 : i32
    %24 = tpu.dynamic_rotate %23 by %c3_i32_4 dim 1 : vector<4x128xf32>, i32 -> vector<4x128xf32>
    %25 = arith.truncf %24 : vector<4x128xf32> to vector<4x128xbf16>
    %c2_i32 = arith.constant 2 : i32
    %26 = tpu.dynamic_rotate %23 by %c2_i32 dim 1 : vector<4x128xf32>, i32 -> vector<4x128xf32>
    %27 = arith.truncf %26 : vector<4x128xf32> to vector<4x128xbf16>
    %c1_i32_5 = arith.constant 1 : i32
    %28 = tpu.dynamic_rotate %23 by %c1_i32_5 dim 1 : vector<4x128xf32>, i32 -> vector<4x128xf32>
    %29 = arith.truncf %28 : vector<4x128xf32> to vector<4x128xbf16>
    %30 = arith.truncf %23 : vector<4x128xf32> to vector<4x128xbf16>
    %c127_i32 = arith.constant 127 : i32
    %31 = tpu.dynamic_rotate %23 by %c127_i32 dim 1 : vector<4x128xf32>, i32 -> vector<4x128xf32>
    %32 = arith.truncf %31 : vector<4x128xf32> to vector<4x128xbf16>
    %c126_i32 = arith.constant 126 : i32
    %33 = tpu.dynamic_rotate %23 by %c126_i32 dim 1 : vector<4x128xf32>, i32 -> vector<4x128xf32>
    %34 = arith.truncf %33 : vector<4x128xf32> to vector<4x128xbf16>
    %c125_i32 = arith.constant 125 : i32
    %35 = tpu.dynamic_rotate %23 by %c125_i32 dim 1 : vector<4x128xf32>, i32 -> vector<4x128xf32>
    %36 = arith.truncf %35 : vector<4x128xf32> to vector<4x128xbf16>
    %37 = tpu.concatenate %25, %27, %29, %30, %32, %34, %36 in 0 : vector<4x128xbf16>, vector<4x128xbf16>, vector<4x128xbf16>, vector<4x128xbf16>, vector<4x128xbf16>, vector<4x128xbf16>, vector<4x128xbf16> -> vector<28x128xbf16>
    %c0_6 = arith.constant 0 : index
    %c0_7 = arith.constant 0 : index
    %38 = vector.load %arg2[%c0_6, %c0_7] : memref<8x28xbf16, #tpu.memory_space<vmem>>, vector<8x28xbf16>
    %cst = arith.constant dense<0.000000e+00> : vector<8x128xf32>
    %39 = tpu.matmul %38, %37, %cst {dimension_numbers = #tpu.dot_dimension_numbers<[1], [0], [0], [1], [0, 0, 1, 1], [], []>} : vector<8x28xbf16>, vector<28x128xbf16>, vector<8x128xf32> -> vector<8x128xf32>
    %c0_8 = arith.constant 0 : index
    %c0_9 = arith.constant 0 : index
    %40 = vector.load %arg3[%c0_8, %c0_9] : memref<8x1xf32, #tpu.memory_space<vmem>>, vector<8x1xf32>
    %41 = vector.broadcast %40 : vector<8x1xf32> to vector<8x128xf32>
    %42 = arith.addf %39, %41 : vector<8x128xf32>
    %cst_10 = arith.constant 0.000000e+00 : f32
    %43 = vector.broadcast %cst_10 : f32 to vector<8x128xf32>
    %44 = arith.maximumf %42, %43 : vector<8x128xf32>
    %cst_11 = arith.constant 0.000000e+00 : f32
    %45 = vector.shape_cast %21 : vector<1x128xi1> to vector<1x128xi1>
    %46 = vector.broadcast %45 : vector<1x128xi1> to vector<8x128xi1>
    %47 = vector.broadcast %cst_11 : f32 to vector<8x128xf32>
    %48 = arith.select %46, %44, %47 : vector<8x128xi1>, vector<8x128xf32>
    %c2_i32_12 = arith.constant 2 : i32
    %49 = tpu.dynamic_rotate %48 by %c2_i32_12 dim 1 : vector<8x128xf32>, i32 -> vector<8x128xf32>
    %50 = arith.truncf %49 : vector<8x128xf32> to vector<8x128xbf16>
    %c1_i32_13 = arith.constant 1 : i32
    %51 = tpu.dynamic_rotate %48 by %c1_i32_13 dim 1 : vector<8x128xf32>, i32 -> vector<8x128xf32>
    %52 = arith.truncf %51 : vector<8x128xf32> to vector<8x128xbf16>
    %53 = arith.truncf %48 : vector<8x128xf32> to vector<8x128xbf16>
    %c127_i32_14 = arith.constant 127 : i32
    %54 = tpu.dynamic_rotate %48 by %c127_i32_14 dim 1 : vector<8x128xf32>, i32 -> vector<8x128xf32>
    %55 = arith.truncf %54 : vector<8x128xf32> to vector<8x128xbf16>
    %c126_i32_15 = arith.constant 126 : i32
    %56 = tpu.dynamic_rotate %48 by %c126_i32_15 dim 1 : vector<8x128xf32>, i32 -> vector<8x128xf32>
    %57 = arith.truncf %56 : vector<8x128xf32> to vector<8x128xbf16>
    %58 = tpu.concatenate %50, %52, %53, %55, %57 in 0 : vector<8x128xbf16>, vector<8x128xbf16>, vector<8x128xbf16>, vector<8x128xbf16>, vector<8x128xbf16> -> vector<40x128xbf16>
    %c0_16 = arith.constant 0 : index
    %c0_17 = arith.constant 0 : index
    %59 = vector.load %arg4[%c0_16, %c0_17] : memref<8x40xbf16, #tpu.memory_space<vmem>>, vector<8x40xbf16>
    %cst_18 = arith.constant dense<0.000000e+00> : vector<8x128xf32>
    %60 = tpu.matmul %59, %58, %cst_18 {dimension_numbers = #tpu.dot_dimension_numbers<[1], [0], [0], [1], [0, 0, 1, 1], [], []>} : vector<8x40xbf16>, vector<40x128xbf16>, vector<8x128xf32> -> vector<8x128xf32>
    %c0_19 = arith.constant 0 : index
    %c0_20 = arith.constant 0 : index
    %61 = vector.load %arg5[%c0_19, %c0_20] : memref<8x1xf32, #tpu.memory_space<vmem>>, vector<8x1xf32>
    %62 = vector.broadcast %61 : vector<8x1xf32> to vector<8x128xf32>
    %63 = arith.addf %60, %62 : vector<8x128xf32>
    %cst_21 = arith.constant 0.000000e+00 : f32
    %64 = vector.broadcast %cst_21 : f32 to vector<8x128xf32>
    %65 = arith.maximumf %63, %64 : vector<8x128xf32>
    %cst_22 = arith.constant 0.000000e+00 : f32
    %66 = vector.shape_cast %21 : vector<1x128xi1> to vector<1x128xi1>
    %67 = vector.broadcast %66 : vector<1x128xi1> to vector<8x128xi1>
    %68 = vector.broadcast %cst_22 : f32 to vector<8x128xf32>
    %69 = arith.select %67, %65, %68 : vector<8x128xi1>, vector<8x128xf32>
    %c1_i32_23 = arith.constant 1 : i32
    %70 = tpu.dynamic_rotate %69 by %c1_i32_23 dim 1 : vector<8x128xf32>, i32 -> vector<8x128xf32>
    %71 = arith.truncf %70 : vector<8x128xf32> to vector<8x128xbf16>
    %72 = arith.truncf %69 : vector<8x128xf32> to vector<8x128xbf16>
    %c127_i32_24 = arith.constant 127 : i32
    %73 = tpu.dynamic_rotate %69 by %c127_i32_24 dim 1 : vector<8x128xf32>, i32 -> vector<8x128xf32>
    %74 = arith.truncf %73 : vector<8x128xf32> to vector<8x128xbf16>
    %75 = tpu.concatenate %71, %72, %74 in 0 : vector<8x128xbf16>, vector<8x128xbf16>, vector<8x128xbf16> -> vector<24x128xbf16>
    %c0_25 = arith.constant 0 : index
    %c0_26 = arith.constant 0 : index
    %76 = vector.load %arg6[%c0_25, %c0_26] : memref<8x24xbf16, #tpu.memory_space<vmem>>, vector<8x24xbf16>
    %cst_27 = arith.constant dense<0.000000e+00> : vector<8x128xf32>
    %77 = tpu.matmul %76, %75, %cst_27 {dimension_numbers = #tpu.dot_dimension_numbers<[1], [0], [0], [1], [0, 0, 1, 1], [], []>} : vector<8x24xbf16>, vector<24x128xbf16>, vector<8x128xf32> -> vector<8x128xf32>
    %c0_28 = arith.constant 0 : index
    %c0_29 = arith.constant 0 : index
    %78 = vector.load %arg7[%c0_28, %c0_29] : memref<8x1xf32, #tpu.memory_space<vmem>>, vector<8x1xf32>
    %79 = vector.broadcast %78 : vector<8x1xf32> to vector<8x128xf32>
    %80 = arith.addf %77, %79 : vector<8x128xf32>
    %c0_30 = arith.constant 0 : index
    %c0_31 = arith.constant 0 : index
    %81 = vector.load %arg8[%c0_30, %c0_31] : memref<8x4xbf16, #tpu.memory_space<vmem>>, vector<8x4xbf16>
    %c0_32 = arith.constant 0 : index
    %c0_33 = arith.constant 0 : index
    %82 = vector.load %arg1[%c0_32, %c0_33] : memref<4x128xbf16, #tpu.memory_space<vmem>>, vector<4x128xbf16>
    %cst_34 = arith.constant dense<0.000000e+00> : vector<8x128xf32>
    %83 = tpu.matmul %81, %82, %cst_34 {dimension_numbers = #tpu.dot_dimension_numbers<[1], [0], [0], [1], [0, 0, 1, 1], [], []>} : vector<8x4xbf16>, vector<4x128xbf16>, vector<8x128xf32> -> vector<8x128xf32>
    %c0_35 = arith.constant 0 : index
    %c0_36 = arith.constant 0 : index
    %84 = vector.load %arg9[%c0_35, %c0_36] : memref<8x1xf32, #tpu.memory_space<vmem>>, vector<8x1xf32>
    %85 = vector.broadcast %84 : vector<8x1xf32> to vector<8x128xf32>
    %86 = arith.addf %83, %85 : vector<8x128xf32>
    %87 = arith.addf %80, %86 : vector<8x128xf32>
    %cst_37 = arith.constant 0.000000e+00 : f32
    %88 = vector.broadcast %cst_37 : f32 to vector<8x128xf32>
    %89 = arith.maximumf %87, %88 : vector<8x128xf32>
    %c0_38 = arith.constant 0 : index
    %c0_39 = arith.constant 0 : index
    %90 = vector.load %arg10[%c0_38, %c0_39] : memref<8x128xf32, #tpu.memory_space<vmem>>, vector<8x128xf32>
    tpu.vector_store %arg10[%c0_38, %c0_39], %89 {strides = array<i32>} : memref<8x128xf32, #tpu.memory_space<vmem>>, vector<8x128xf32>,
    return
  }
  func.func @transform_0(%arg0: i32) -> (i32, i32) {
    %c0_i32 = arith.constant 0 : i32
    %c0_i32_0 = arith.constant 0 : i32
    return %c0_i32, %arg0 : i32, i32
  }
  func.func @transform_1(%arg0: i32) -> (i32, i32) {
    %c0_i32 = arith.constant 0 : i32
    %c0_i32_0 = arith.constant 0 : i32
    %c0_i32_1 = arith.constant 0 : i32
    return %c0_i32, %c0_i32_0 : i32, i32
  }
  func.func @transform_2(%arg0: i32) -> (i32, i32) {
    %c0_i32 = arith.constant 0 : i32
    %c0_i32_0 = arith.constant 0 : i32
    %c0_i32_1 = arith.constant 0 : i32
    return %c0_i32, %c0_i32_0 : i32, i32
  }
  func.func @transform_3(%arg0: i32) -> (i32, i32) {
    %c0_i32 = arith.constant 0 : i32
    %c0_i32_0 = arith.constant 0 : i32
    %c0_i32_1 = arith.constant 0 : i32
    return %c0_i32, %c0_i32_0 : i32, i32
  }
  func.func @transform_4(%arg0: i32) -> (i32, i32) {
    %c0_i32 = arith.constant 0 : i32
    %c0_i32_0 = arith.constant 0 : i32
    %c0_i32_1 = arith.constant 0 : i32
    return %c0_i32, %c0_i32_0 : i32, i32
  }
  func.func @transform_5(%arg0: i32) -> (i32, i32) {
    %c0_i32 = arith.constant 0 : i32
    %c0_i32_0 = arith.constant 0 : i32
    %c0_i32_1 = arith.constant 0 : i32
    return %c0_i32, %c0_i32_0 : i32, i32
  }
  func.func @transform_6(%arg0: i32) -> (i32, i32) {
    %c0_i32 = arith.constant 0 : i32
    %c0_i32_0 = arith.constant 0 : i32
    %c0_i32_1 = arith.constant 0 : i32
    return %c0_i32, %c0_i32_0 : i32, i32
  }
  func.func @transform_7(%arg0: i32) -> (i32, i32) {
    %c0_i32 = arith.constant 0 : i32
    %c0_i32_0 = arith.constant 0 : i32
    %c0_i32_1 = arith.constant 0 : i32
    return %c0_i32, %c0_i32_0 : i32, i32
  }
  func.func @transform_8(%arg0: i32) -> (i32, i32) {
    %c0_i32 = arith.constant 0 : i32
    %c0_i32_0 = arith.constant 0 : i32
    %c0_i32_1 = arith.constant 0 : i32
    return %c0_i32, %c0_i32_0 : i32, i32
  }
  func.func @transform_9(%arg0: i32) -> (i32, i32) {
    %c0_i32 = arith.constant 0 : i32
    %c0_i32_0 = arith.constant 0 : i32
    return %c0_i32, %arg0 : i32, i32
  }
}

</mosaic_0001>

<bundles_post_ra>
// kernel: tpu_custom_call.1
= control target key start
LH: loop header
LB: loop body
LE: loop exit
PB: predicated region body
PF: predicated region fallthrough
CT: control target
= control target key end

     0   :  { %14 = vsyncpa [#allocation3], 0  ;;  %s955_s0 = inlined_call_operand.vmem [shape: bf16[4,256], index: 0, kind: input, shape index: {}]   ;;  %s956_s1 = inlined_call_operand.vmem [shape: bf16[8,28], index: 1, kind: input, shape index: {}]   ;;  %s957_s2 = inlined_call_operand.vmem [shape: f32[8,1], index: 2, kind: input, shape index: {}]   ;;  %s958_s3 = inlined_call_operand.vmem [shape: bf16[8,40], index: 3, kind: input, shape index: {}]   ;;  %s959_s4 = inlined_call_operand.vmem [shape: f32[8,1], index: 4, kind: input, shape index: {}]   ;;  %s960_s5 = inlined_call_operand.vmem [shape: bf16[8,24], index: 5, kind: input, shape index: {}]   ;;  %s961_s6 = inlined_call_operand.vmem [shape: f32[8,1], index: 6, kind: input, shape index: {}]   ;;  %s962_s7 = inlined_call_operand.vmem [shape: bf16[8,4], index: 7, kind: input, shape index: {}]   ;;  %s963_s8 = inlined_call_operand.vmem [shape: f32[8,1], index: 8, kind: input, shape index: {}]   ;;  %s964_s9 = inlined_call_operand.hbm [shape: f32[8,256], index: 9, kind: output, shape index: {}]  }
   0x1   :  { %16 = vsyncpa [#allocation3 + $0x1], 0  ;;  %s813_s30 = smov 0   ;;  %s815_s10 = smov 0  }
   0x2   :  { %s817_s11 = smov 0   ;;  %s819_s12 = smov 0  }
   0x3 LB: > { %s834_s13 = sadd.s32 4294967295, %s754_s12   ;;  %s630_s14 = sadd.s32 4294967294, %s754_s12   ;;  %s754_s12 = sphi %s819_s12, %s972_s12   ;;  %s750_s11 = sphi %s817_s11, %s971_s11   ;;  %s746_s10 = sphi %s815_s10, %s970_s10   ;;  %s742_s30 = sphi %s813_s30, %s969_s30  }
   0x4   : > { %s838_s15 = sadd.s32 1, %s754_s12   ;;  %s223_s16 = sadd.s32 1, %s750_s11 }
   0x5   : > { %s220_s17 = ssub.s32 %s754_s12, %s838_s15  ;;  %p233_p0 = scmp.ne.s32.totalorder %s750_s11, %s746_s10 }
   0x6   : > { %p221_p1 = scmp.eq.s32.totalorder %s220_s17, 0  ;;  %p234_p2 = scmp.eq.s32.totalorder %s834_s13, 1 }
   0x7   : > { %p239_p3 = scmp.ne.s32.totalorder %s746_s10, %s742_s30  ;;  %p240_p4 = scmp.eq.s32.totalorder %s630_s14, 1 }
   0x8   : > { %s849_s18 = scalar_select %p221_p1, %s750_s11, %s223_s16  }
   0x9   : > { %p851_p5 = por %p234_p2, %p233_p0  ;;  %p855_p6 = por %p240_p4, %p239_p3 }
   0xa   : > { %p633_p7 = scmp.ge.s32.totalorder %s754_s12, 1  ;;  %p289_p8 = scmp.lt.s32.totalorder %s754_s12, 3 }
   0xc   : > { %p290_p9 = pnand %p633_p7, %p289_p8 }
   0xd   : > { %p324_p10 = scmp.lt.s32.totalorder (!%p290_p9), %s834_s13, 1  ;;  %s756_s26 = smov (!%p290_p9), 2  }
   0xe   : > { %293 = sbr.rel (%p290_p9) target bundleno = 826 (0x33a), region = 56  ;;  %s757_s27 = smov (!%p290_p9), 126  }
   0xf   : > { %s758_s28 = smov (!%p290_p9), 1   ;;  %s759_s29 = smov (!%p290_p9), 127  }
  0x10   : > { %s760_s14 = smov (!%p290_p9), 125   ;;  %s761_s16 = smov (!%p290_p9), 3  }
  0x11   : > { %s321_s24 = sand.u32 (!%p290_p9), 1, %s746_s10  }
  0x12   : > { %s556_s23 = scalar_lea.sflag (!%p290_p9), [#allocation3], %s321_s24 }
  0x13   : > { %s325_s21 = scalar_select %p324_p10, %s834_s13, 1  ;;  %v400_v2 = vld [vmem:[%s957_s2] sm:$0xff]  ;;  %v762_v3 = vmov 0   ;;  %vm384_vm0 = vcmask 1041408   ;;  %vm388_vm1 = vcmask 1043456   ;;  %vm391_vm2 = vcmask 1045504  }
  0x14   : > { %690 = vset.pattern.permute.xlu0 %v762_v3  ;;  %691 = vset.pattern.permute.xlu1 %v762_v3  ;;  %v457_v4 = vld [vmem:[%s959_s4] sm:$0xff]  ;;  %vm406_vm3 = vcmask 228352   ;;  %v329_v36 = vlaneseq  ;;  %vm463_vm7 = vcmask 326656   ;;  %vm533_vm8 = vcmask 31744  }
  0x15   : > { %s635_s22 = sshll.u32 %s325_s21, 1  ;;  %v500_v8 = vld [vmem:[%s961_s6] sm:$0xff]  ;;  %vm506_vm9 = vcmask 195584  }
  0x16   : > { %s327_s25 = scalar_lea.vmem %s955_s0, %s635_s22  ;;  %v399_v35 = vld [vmem:[%s956_s1] sm:$0xf]  ;;  %v330_v37 = vand.u32 127, %v329_v36 }
  0x17   : > { %v866_v0 = vld [vmem:[%s327_s25] sm:$0x3]  ;;  %s634_s25 = sshll.u32 %s321_s24, 3 }
  0x18   : > { %v347_v1 = vunpack.c.l.bf16 %v866_v0  ;;  %375 = vst [vmem:[#allocation1 + $0x3] ss:$4 sm:$0xff] %v866_v0  ;;  %vm343_vm4 = vcmp.ge.s32.totalorder %v330_v37, 3  ;;  %vm344_vm5 = vcmp.lt.s32.totalorder %v330_v37, 19  ;;  %v456_v61 = vld [vmem:[%s958_s3] sm:$0xf] }
  0x19   : > { %vm890_vm6 = vmand %vm343_vm4, %vm344_vm5  ;;  %s323_s17 = scalar_lea.vmem [#allocation2], %s634_s25  ;;  %s712_s25 = scalar_lea.hbm %s964_s9, 16 }
  0x1a   : > { %351 = vrot.lane.b32.xlu1 %v347_v1, %s756_s26  ;;  %360 = vrot.lane.b32.xlu0 %v347_v1, %s757_s27  ;;  %s568_s21 = sshll.u32 %s323_s17, 4  ;;  %s569_s21 = int_to_ptr.vmem [resolvable:$true] %s568_s21 }
  0x1b   : > { %354 = vrot.lane.b32.xlu2 %v347_v1, %s758_s28 }
  0x1f   : > { %v376_v32 = vld.sshfl [vmem:[#allocation1] sm:$0xff pattern:$0x73625140] }
  0x22   : > { %357 = vrot.lane.b32.xlu1 %v347_v1, %s759_s29  ;;  %363 = vrot.lane.b32.xlu0 %v347_v1, %s760_s14  ;;  %s641_s14 = sshll.u32 %s834_s13, 3 }
  0x23   : > { %348 = vrot.lane.b32.xlu2 %v347_v1, %s761_s16 }
  0x2a   : > { %403 = vperm.xlu0 %690, %v400_v2  }
  0x32   : > { %460 = vperm.xlu0 %690, %v457_v4  }
  0x3a   : > { %503 = vperm.xlu0 %690, %v500_v8  }
  0x75   : > { %v355_v5 = vpop.permute.xlu2 %354 }
  0x76   : > { %v356_v13 = vpack.c.bf16 %v355_v5, %v355_v5  ;;  %v537_v5 = vsel %vm384_vm0, %v866_v0, 0 }
  0x77   : > { %546 = vmatpush.bf16.msra.mxu3 %v537_v5 }
  0x78   : > { %v371_v19 = vunpack.c.l.b16 %v356_v13 }
  0x7a   : > { %v372_v26 = vpack.c.b16 %v371_v19, %v371_v19 }
  0x7d   : > { %v349_v15 = vpop.permute.xlu2 %348 }
  0x7e   : > { %v350_v23 = vpack.c.bf16 %v349_v15, %v349_v15 }
  0x8c   : > { %v352_v6 = vpop.permute.xlu1 %351  ;;  %v361_v7 = vpop.permute.xlu0 %360 }
  0x8d   : > { %v353_v9 = vpack.c.bf16 %v352_v6, %v352_v6  ;;  %v362_v10 = vpack.c.bf16 %v361_v7, %v361_v7  ;;  %v526_v6 = vld [vmem:[%s962_s7] sm:$0xf] }
  0x8e   : > { %639 = vmatmul.msk.bf16.vlgmr.msra.gmra.mxu3 %vm533_vm8, %v526_v6  ;;  %v527_v7 = vld [vmem:[%s963_s8] sm:$0xff] }
  0x8f   : > { %v367_v11 = vunpack.c.l.b16 %v353_v9  ;;  %v378_v12 = vunpack.c.l.b16 %v362_v10 }
  0x91   : > { %v368_v14 = vpack.c.b16 %v367_v11, %v367_v11  ;;  %v379_v16 = vpack.c.b16 %v378_v12, %v378_v12 }
  0x93   : > { %v369_v21 = vrot.slane %v368_v14, 6  ;;  %v380_v25 = vrot.slane %v379_v16, 6  ;;  %v499_v16 = vld [vmem:[%s960_s5] sm:$0xf] }
  0x94   : > { %v358_v17 = vpop.permute.xlu1 %357  ;;  %v364_v18 = vpop.permute.xlu0 %363 }
  0x95   : > { %v365_v20 = vpack.c.bf16 %v364_v18, %v364_v18  ;;  %v359_v22 = vpack.c.bf16 %v358_v17, %v358_v17  ;;  %v387_v29 = vsel %vm384_vm0, %v350_v23, %v369_v21 }
  0x96   : > { %v390_v33 = vsel %vm388_vm1, %v387_v29, %v372_v26 }
  0x97   : > { %v382_v24 = vunpack.c.l.b16 %v365_v20  ;;  %v396_v28 = vsel %vm384_vm0, %v359_v22, %v380_v25  ;;  %v392_v34 = vsel %vm391_vm2, %v390_v33, %v376_v32 }
  0x99   : > { %v383_v27 = vpack.c.b16 %v382_v24, %v382_v24 }
  0x9b   : > { %v398_v30 = vsel %vm388_vm1, %v396_v28, %v383_v27 }
  0x9c   : > { %v410_v31 = vsel %vm391_vm2, %v398_v30, 0  ;;  %v404_v38 = vpop.permute.xlu0 %403 }
  0x9d   : > { %418 = vmatpush.bf16.msra.mxu0 %v410_v31 }
  0xa1   : > { %419 = vmatpush.bf16.msra.mxu0 %v392_v34 }
  0xa4   : > { %636 = vmatmul.msk.bf16.vlgmr.msra.gmra.mxu0 %vm406_vm3, %v399_v35  ;;  %v461_v62 = vpop.permute.xlu0 %460 }
  0xac   : > { %v504_v21 = vpop.permute.xlu0 %503 }
 0x111   : > { %v548_v17 = vpop.f32.mrf.mxu3 }
 0x119   : > { %v550_v18 = vpop.f32.mrf.mxu3 }
 0x121   : > { %v421_v39 = vpop.f32.mrf.mxu0 }
 0x122   : > { %v422_v40 = vadd.f32 %v421_v39, %v404_v38 }
 0x124   : > { %v425_v42 = vmax.f32 %v422_v40, 0.0 }
 0x126   : > { %v428_v43 = vsel %vm890_vm6, %v425_v42, 0.0 }
 0x127   : > { %439 = vrot.lane.b32.xlu2 %v428_v43, %s757_s27  ;;  %436 = vrot.lane.b32.xlu1 %v428_v43, %s759_s29  ;;  %v435_v52 = vpack.c.bf16 %v428_v43, %v428_v43  ;;  %s566_s27 = scalar_lea.hbm %s964_s9, %s641_s14 }
 0x128   : > { %s570_s22 = sshll.u32 %s566_s27, 4  ;;  %s571_s22 = int_to_ptr.hbm [resolvable:$true] %s570_s22 }
 0x129   : > { %v423_v44 = vpop.f32.mrf.mxu0  ;;  %s706_s13 = sshra.s32 %s571_s22, 4  ;;  %s707_s13 = int_to_ptr.hbm [resolvable:$true] %s706_s13 }
 0x12a   : > { %p713_p0 = scmp.lt.s32.totalorder %s707_s13, %s964_s9 }
 0x12f   : > { %429 = vrot.lane.b32.xlu2 %v428_v43, %s756_s26  ;;  %432 = vrot.lane.b32.xlu1 %v428_v43, %s758_s28 }
 0x181   : > { %v440_v45 = vpop.permute.xlu2 %439 }
 0x182   : > { %v441_v46 = vpack.c.bf16 %v440_v45, %v440_v45 }
 0x184   : > { %v468_v47 = vsel %vm388_vm1, %v441_v46, 0 }
 0x185   : > { %475 = vmatpush.bf16.msra.mxu1 %v468_v47 }
 0x189   : > { %v430_v56 = vpop.permute.xlu2 %429 }
 0x18a   : > { %v431_v58 = vpack.c.bf16 %v430_v56, %v430_v56 }
 0x199   : > { %v437_v48 = vpop.permute.xlu1 %436 }
 0x19a   : > { %v438_v49 = vpack.c.bf16 %v437_v48, %v437_v48 }
 0x19c   : > { %v446_v50 = vunpack.c.l.b16 %v438_v49 }
 0x19e   : > { %v447_v51 = vpack.c.b16 %v446_v50, %v446_v50 }
 0x1a0   : > { %v454_v53 = vsel %vm388_vm1, %v435_v52, %v447_v51 }
 0x1a1   : > { %v433_v54 = vpop.permute.xlu1 %432  ;;  %476 = vmatpush.bf16.msra.mxu1 %v454_v53 }
 0x1a2   : > { %v434_v55 = vpack.c.bf16 %v433_v54, %v433_v54 }
 0x1a4   : > { %v443_v57 = vunpack.c.l.b16 %v434_v55 }
 0x1a6   : > { %v444_v59 = vpack.c.b16 %v443_v57, %v443_v57 }
 0x1a8   : > { %v450_v60 = vsel %vm388_vm1, %v431_v58, %v444_v59 }
 0x1a9   : > { %477 = vmatpush.bf16.msra.mxu1 %v450_v60 }
 0x1ac   : > { %637 = vmatmul.msk.bf16.vlgmr.msra.gmra.mxu1 %vm463_vm7, %v456_v61 }
 0x229   : > { %v479_v63 = vpop.f32.mrf.mxu1 }
 0x22a   : > { %v480_v1 = vadd.f32 %v479_v63, %v461_v62 }
 0x22c   : > { %v483_v2 = vmax.f32 %v480_v1, 0.0 }
 0x22e   : > { %v484_v3 = vsel %vm890_vm6, %v483_v2, 0.0 }
 0x22f   : > { %485 = vrot.lane.b32.xlu2 %v484_v3, %s758_s28  ;;  %489 = vrot.lane.b32.xlu1 %v484_v3, %s759_s29  ;;  %v488_v8 = vpack.c.bf16 %v484_v3, %v484_v3  ;;  %s708_s28 = scalar_lea.hbm %s707_s13, 8 }
 0x230   : > { %p709_p11 = scmp.ne.s32.totalorder %s707_s13, %s708_s28  ;;  %p714_p1 = scmp.lt.s32.totalorder %s712_s25, %s708_s28 }
 0x231   : > { %v481_v4 = vpop.f32.mrf.mxu1  ;;  %v493_v11 = vunpack.c.l.b16 %v488_v8 }
 0x232   : > { %p710_p12 = pnand %p709_p11, %p851_p5  ;;  %p715_p2 = por %p714_p1, %p713_p0 }
 0x233   : > { %v494_v14 = vpack.c.b16 %v493_v11, %v493_v11 }
 0x234   : > { %p711_p13 = pneg %p710_p12 }
 0x236   : > { %p716_p3 = pnand %p715_p2, %p711_p13 }
 0x237   : > { %530 = vperm.xlu1 %691, %v527_v7  }
 0x289   : > { %v486_v9 = vpop.permute.xlu2 %485 }
 0x28a   : > { %v487_v0 = vpack.c.bf16 %v486_v9, %v486_v9 }
 0x28c   : > { %v497_v15 = vsel %vm388_vm1, %v487_v0, %v494_v14 }
 0x2a1   : > { %v490_v10 = vpop.permute.xlu1 %489 }
 0x2a2   : > { %v491_v12 = vpack.c.bf16 %v490_v10, %v490_v10 }
 0x2a4   : > { %v511_v13 = vsel %vm388_vm1, %v491_v12, 0 }
 0x2a5   : > { %519 = vmatpush.bf16.msra.mxu2 %v511_v13 }
 0x2a9   : > { %520 = vmatpush.bf16.msra.mxu2 %v497_v15  ;;  %v531_v19 = vpop.permute.xlu1 %530 }
 0x2aa   : > { %v549_v20 = vadd.f32 %v548_v17, %v531_v19 }
 0x2ac   : > { %638 = vmatmul.msk.bf16.vlgmr.msra.gmra.mxu2 %vm506_vm9, %v499_v16 }
 0x32f   : > { %v522_v22 = vpop.f32.mrf.mxu2 }
 0x330   : > { %v523_v23 = vadd.f32 %v522_v22, %v504_v21 }
 0x332   : > { %v552_v24 = vadd.f32 %v549_v20, %v523_v23 }
 0x334   : > { %v553_v25 = vmax.f32 %v552_v24, 0.0 }
 0x336   : > { %554 = vst [vmem:[%s323_s17] sm:$0xff] %v553_v25 }
 0x337   : > { %v524_v26 = vpop.f32.mrf.mxu2 }
 0x338   : > { %719 = shalt.err (!%p716_p3)
}
 0x339   : > { %644 = dma.vmem_to_hbm [thread:$0]  (%p851_p5), %s569_s21, 128, %s571_s22, %s556_s23  }
 0x33a PF: > { %p650_p4 = scmp.ge.s32.totalorder %s754_s12, 2  ;;  %s582_s24 = sand.u32 1, %s742_s30  }
 0x33b   : > { %s583_s27 = scalar_lea.sflag [#allocation3], %s582_s24 }
 0x33c   : > { %p647_p7 = pnand %p650_p4, %p855_p6 }
 0x33e   : > { %p648_p8 = pneg %p647_p7 }
 0x340   : > { %737 = dma.done.wait (%p648_p8), %s583_s27, 128  }
 0x341   : > { %739 = vsyncadd (%p648_p8), %s583_s27, 4294967168  ;;  %p19_p9 = scmp.ge.s32.totalorder %s838_s15, 4   ;;  %s969_s30 = smov %s746_s10 }
 0x342   : > { %s970_s10 = smov %s750_s11  ;;  %s971_s11 = smov %s849_s18 }
 0x343   : > { %s972_s12 = smov %s838_s15  ;;  %21 = sbr.rel (!%p19_p9) target bundleno = 3 (0x3), region = 92 }
 0x348   :  { %589 = vsyncpa [#allocation3], 1 }
 0x349   :  { %591 = vsyncpa [#allocation3 + $0x1], 1 }

// kernel: tpu_custom_call.1
= control target key start
LH: loop header
LB: loop body
LE: loop exit
PB: predicated region body
PF: predicated region fallthrough
CT: control target
= control target key end

     0   :  { %14 = vsyncpa [#allocation3], 0  ;;  %s955_s0 = inlined_call_operand.vmem [shape: bf16[4,256], index: 0, kind: input, shape index: {}]   ;;  %s956_s1 = inlined_call_operand.vmem [shape: bf16[8,28], index: 1, kind: input, shape index: {}]   ;;  %s957_s2 = inlined_call_operand.vmem [shape: f32[8,1], index: 2, kind: input, shape index: {}]   ;;  %s958_s3 = inlined_call_operand.vmem [shape: bf16[8,40], index: 3, kind: input, shape index: {}]   ;;  %s959_s4 = inlined_call_operand.vmem [shape: f32[8,1], index: 4, kind: input, shape index: {}]   ;;  %s960_s5 = inlined_call_operand.vmem [shape: bf16[8,24], index: 5, kind: input, shape index: {}]   ;;  %s961_s6 = inlined_call_operand.vmem [shape: f32[8,1], index: 6, kind: input, shape index: {}]   ;;  %s962_s7 = inlined_call_operand.vmem [shape: bf16[8,4], index: 7, kind: input, shape index: {}]   ;;  %s963_s8 = inlined_call_operand.vmem [shape: f32[8,1], index: 8, kind: input, shape index: {}]   ;;  %s964_s9 = inlined_call_operand.hbm [shape: f32[8,256], index: 9, kind: output, shape index: {}]  }
   0x1   :  { %16 = vsyncpa [#allocation3 + $0x1], 0  ;;  %s813_s30 = smov 0   ;;  %s815_s10 = smov 0  }
   0x2   :  { %s817_s11 = smov 0   ;;  %s819_s12 = smov 0  }
   0x3 LB: > { %s834_s13 = sadd.s32 4294967295, %s754_s12   ;;  %s630_s14 = sadd.s32 4294967294, %s754_s12   ;;  %s754_s12 = sphi %s819_s12, %s972_s12   ;;  %s750_s11 = sphi %s817_s11, %s971_s11   ;;  %s746_s10 = sphi %s815_s10, %s970_s10   ;;  %s742_s30 = sphi %s813_s30, %s969_s30  }
   0x4   : > { %s838_s15 = sadd.s32 1, %s754_s12   ;;  %s223_s16 = sadd.s32 1, %s750_s11 }
   0x5   : > { %s220_s17 = ssub.s32 %s754_s12, %s838_s15  ;;  %p233_p0 = scmp.ne.s32.totalorder %s750_s11, %s746_s10 }
   0x6   : > { %p221_p1 = scmp.eq.s32.totalorder %s220_s17, 0  ;;  %p234_p2 = scmp.eq.s32.totalorder %s834_s13, 1 }
   0x7   : > { %p239_p3 = scmp.ne.s32.totalorder %s746_s10, %s742_s30  ;;  %p240_p4 = scmp.eq.s32.totalorder %s630_s14, 1 }
   0x8   : > { %s849_s18 = scalar_select %p221_p1, %s750_s11, %s223_s16  }
   0x9   : > { %p851_p5 = por %p234_p2, %p233_p0  ;;  %p855_p6 = por %p240_p4, %p239_p3 }
   0xa   : > { %p633_p7 = scmp.ge.s32.totalorder %s754_s12, 1  ;;  %p289_p8 = scmp.lt.s32.totalorder %s754_s12, 3 }
   0xc   : > { %p290_p9 = pnand %p633_p7, %p289_p8 }
   0xd   : > { %p324_p10 = scmp.lt.s32.totalorder (!%p290_p9), %s834_s13, 1  ;;  %s756_s26 = smov (!%p290_p9), 2  }
   0xe   : > { %293 = sbr.rel (%p290_p9) target bundleno = 826 (0x33a), region = 56  ;;  %s757_s27 = smov (!%p290_p9), 126  }
   0xf   : > { %s758_s28 = smov (!%p290_p9), 1   ;;  %s759_s29 = smov (!%p290_p9), 127  }
  0x10   : > { %s760_s14 = smov (!%p290_p9), 125   ;;  %s761_s16 = smov (!%p290_p9), 3  }
  0x11   : > { %s321_s24 = sand.u32 (!%p290_p9), 1, %s746_s10  }
  0x12   : > { %s556_s23 = scalar_lea.sflag (!%p290_p9), [#allocation3], %s321_s24 }
  0x13   : > { %s325_s21 = scalar_select %p324_p10, %s834_s13, 1  ;;  %v400_v2 = vld [vmem:[%s957_s2] sm:$0xff]  ;;  %v762_v3 = vmov 0   ;;  %vm384_vm0 = vcmask 1041408   ;;  %vm388_vm1 = vcmask 1043456   ;;  %vm391_vm2 = vcmask 1045504  }
  0x14   : > { %690 = vset.pattern.permute.xlu0 %v762_v3  ;;  %691 = vset.pattern.permute.xlu1 %v762_v3  ;;  %v457_v4 = vld [vmem:[%s959_s4] sm:$0xff]  ;;  %vm406_vm3 = vcmask 228352   ;;  %v329_v36 = vlaneseq  ;;  %vm463_vm7 = vcmask 326656   ;;  %vm533_vm8 = vcmask 31744  }
  0x15   : > { %s635_s22 = sshll.u32 %s325_s21, 1  ;;  %v500_v8 = vld [vmem:[%s961_s6] sm:$0xff]  ;;  %vm506_vm9 = vcmask 195584  }
  0x16   : > { %s327_s25 = scalar_lea.vmem %s955_s0, %s635_s22  ;;  %v399_v35 = vld [vmem:[%s956_s1] sm:$0xf]  ;;  %v330_v37 = vand.u32 127, %v329_v36 }
  0x17   : > { %v866_v0 = vld [vmem:[%s327_s25] sm:$0x3]  ;;  %s634_s25 = sshll.u32 %s321_s24, 3 }
  0x18   : > { %v347_v1 = vunpack.c.l.bf16 %v866_v0  ;;  %375 = vst [vmem:[#allocation1 + $0x3] ss:$4 sm:$0xff] %v866_v0  ;;  %vm343_vm4 = vcmp.ge.s32.totalorder %v330_v37, 3  ;;  %vm344_vm5 = vcmp.lt.s32.totalorder %v330_v37, 19  ;;  %v456_v61 = vld [vmem:[%s958_s3] sm:$0xf] }
  0x19   : > { %vm890_vm6 = vmand %vm343_vm4, %vm344_vm5  ;;  %s323_s17 = scalar_lea.vmem [#allocation2], %s634_s25  ;;  %s712_s25 = scalar_lea.hbm %s964_s9, 16 }
  0x1a   : > { %351 = vrot.lane.b32.xlu1 %v347_v1, %s756_s26  ;;  %360 = vrot.lane.b32.xlu0 %v347_v1, %s757_s27  ;;  %s568_s21 = sshll.u32 %s323_s17, 4  ;;  %s569_s21 = int_to_ptr.vmem [resolvable:$true] %s568_s21 }
  0x1b   : > { %354 = vrot.lane.b32.xlu2 %v347_v1, %s758_s28 }
  0x1f   : > { %v376_v32 = vld.sshfl [vmem:[#allocation1] sm:$0xff pattern:$0x73625140] }
  0x22   : > { %357 = vrot.lane.b32.xlu1 %v347_v1, %s759_s29  ;;  %363 = vrot.lane.b32.xlu0 %v347_v1, %s760_s14  ;;  %s641_s14 = sshll.u32 %s834_s13, 3 }
  0x23   : > { %348 = vrot.lane.b32.xlu2 %v347_v1, %s761_s16 }
  0x2a   : > { %403 = vperm.xlu0 %690, %v400_v2  }
  0x32   : > { %460 = vperm.xlu0 %690, %v457_v4  }
  0x3a   : > { %503 = vperm.xlu0 %690, %v500_v8  }
  0x75   : > { %v355_v5 = vpop.permute.xlu2 %354 }
  0x76   : > { %v356_v13 = vpack.c.bf16 %v355_v5, %v355_v5  ;;  %v537_v5 = vsel %vm384_vm0, %v866_v0, 0 }
  0x77   : > { %546 = vmatpush.bf16.msra.mxu3 %v537_v5 }
  0x78   : > { %v371_v19 = vunpack.c.l.b16 %v356_v13 }
  0x7a   : > { %v372_v26 = vpack.c.b16 %v371_v19, %v371_v19 }
  0x7d   : > { %v349_v15 = vpop.permute.xlu2 %348 }
  0x7e   : > { %v350_v23 = vpack.c.bf16 %v349_v15, %v349_v15 }
  0x8c   : > { %v352_v6 = vpop.permute.xlu1 %351  ;;  %v361_v7 = vpop.permute.xlu0 %360 }
  0x8d   : > { %v353_v9 = vpack.c.bf16 %v352_v6, %v352_v6  ;;  %v362_v10 = vpack.c.bf16 %v361_v7, %v361_v7  ;;  %v526_v6 = vld [vmem:[%s962_s7] sm:$0xf] }
  0x8e   : > { %639 = vmatmul.msk.bf16.vlgmr.msra.gmra.mxu3 %vm533_vm8, %v526_v6  ;;  %v527_v7 = vld [vmem:[%s963_s8] sm:$0xff] }
  0x8f   : > { %v367_v11 = vunpack.c.l.b16 %v353_v9  ;;  %v378_v12 = vunpack.c.l.b16 %v362_v10 }
  0x91   : > { %v368_v14 = vpack.c.b16 %v367_v11, %v367_v11  ;;  %v379_v16 = vpack.c.b16 %v378_v12, %v378_v12 }
  0x93   : > { %v369_v21 = vrot.slane %v368_v14, 6  ;;  %v380_v25 = vrot.slane %v379_v16, 6  ;;  %v499_v16 = vld [vmem:[%s960_s5] sm:$0xf] }
  0x94   : > { %v358_v17 = vpop.permute.xlu1 %357  ;;  %v364_v18 = vpop.permute.xlu0 %363 }
  0x95   : > { %v365_v20 = vpack.c.bf16 %v364_v18, %v364_v18  ;;  %v359_v22 = vpack.c.bf16 %v358_v17, %v358_v17  ;;  %v387_v29 = vsel %vm384_vm0, %v350_v23, %v369_v21 }
  0x96   : > { %v390_v33 = vsel %vm388_vm1, %v387_v29, %v372_v26 }
  0x97   : > { %v382_v24 = vunpack.c.l.b16 %v365_v20  ;;  %v396_v28 = vsel %vm384_vm0, %v359_v22, %v380_v25  ;;  %v392_v34 = vsel %vm391_vm2, %v390_v33, %v376_v32 }
  0x99   : > { %v383_v27 = vpack.c.b16 %v382_v24, %v382_v24 }
  0x9b   : > { %v398_v30 = vsel %vm388_vm1, %v396_v28, %v383_v27 }
  0x9c   : > { %v410_v31 = vsel %vm391_vm2, %v398_v30, 0  ;;  %v404_v38 = vpop.permute.xlu0 %403 }
  0x9d   : > { %418 = vmatpush.bf16.msra.mxu0 %v410_v31 }
  0xa1   : > { %419 = vmatpush.bf16.msra.mxu0 %v392_v34 }
  0xa4   : > { %636 = vmatmul.msk.bf16.vlgmr.msra.gmra.mxu0 %vm406_vm3, %v399_v35  ;;  %v461_v62 = vpop.permute.xlu0 %460 }
  0xac   : > { %v504_v21 = vpop.permute.xlu0 %503 }
 0x111   : > { %v548_v17 = vpop.f32.mrf.mxu3 }
 0x119   : > { %v550_v18 = vpop.f32.mrf.mxu3 }
 0x121   : > { %v421_v39 = vpop.f32.mrf.mxu0 }
 0x122   : > { %v422_v40 = vadd.f32 %v421_v39, %v404_v38 }
 0x124   : > { %v425_v42 = vmax.f32 %v422_v40, 0.0 }
 0x126   : > { %v428_v43 = vsel %vm890_vm6, %v425_v42, 0.0 }
 0x127   : > { %439 = vrot.lane.b32.xlu2 %v428_v43, %s757_s27  ;;  %436 = vrot.lane.b32.xlu1 %v428_v43, %s759_s29  ;;  %v435_v52 = vpack.c.bf16 %v428_v43, %v428_v43  ;;  %s566_s27 = scalar_lea.hbm %s964_s9, %s641_s14 }
 0x128   : > { %s570_s22 = sshll.u32 %s566_s27, 4  ;;  %s571_s22 = int_to_ptr.hbm [resolvable:$true] %s570_s22 }
 0x129   : > { %v423_v44 = vpop.f32.mrf.mxu0  ;;  %s706_s13 = sshra.s32 %s571_s22, 4  ;;  %s707_s13 = int_to_ptr.hbm [resolvable:$true] %s706_s13 }
 0x12a   : > { %p713_p0 = scmp.lt.s32.totalorder %s707_s13, %s964_s9 }
 0x12f   : > { %429 = vrot.lane.b32.xlu2 %v428_v43, %s756_s26  ;;  %432 = vrot.lane.b32.xlu1 %v428_v43, %s758_s28 }
 0x181   : > { %v440_v45 = vpop.permute.xlu2 %439 }
 0x182   : > { %v441_v46 = vpack.c.bf16 %v440_v45, %v440_v45 }
 0x184   : > { %v468_v47 = vsel %vm388_vm1, %v441_v46, 0 }
 0x185   : > { %475 = vmatpush.bf16.msra.mxu1 %v468_v47 }
 0x189   : > { %v430_v56 = vpop.permute.xlu2 %429 }
 0x18a   : > { %v431_v58 = vpack.c.bf16 %v430_v56, %v430_v56 }
 0x199   : > { %v437_v48 = vpop.permute.xlu1 %436 }
 0x19a   : > { %v438_v49 = vpack.c.bf16 %v437_v48, %v437_v48 }
 0x19c   : > { %v446_v50 = vunpack.c.l.b16 %v438_v49 }
 0x19e   : > { %v447_v51 = vpack.c.b16 %v446_v50, %v446_v50 }
 0x1a0   : > { %v454_v53 = vsel %vm388_vm1, %v435_v52, %v447_v51 }
 0x1a1   : > { %v433_v54 = vpop.permute.xlu1 %432  ;;  %476 = vmatpush.bf16.msra.mxu1 %v454_v53 }
 0x1a2   : > { %v434_v55 = vpack.c.bf16 %v433_v54, %v433_v54 }
 0x1a4   : > { %v443_v57 = vunpack.c.l.b16 %v434_v55 }
 0x1a6   : > { %v444_v59 = vpack.c.b16 %v443_v57, %v443_v57 }
 0x1a8   : > { %v450_v60 = vsel %vm388_vm1, %v431_v58, %v444_v59 }
 0x1a9   : > { %477 = vmatpush.bf16.msra.mxu1 %v450_v60 }
 0x1ac   : > { %637 = vmatmul.msk.bf16.vlgmr.msra.gmra.mxu1 %vm463_vm7, %v456_v61 }
 0x229   : > { %v479_v63 = vpop.f32.mrf.mxu1 }
 0x22a   : > { %v480_v1 = vadd.f32 %v479_v63, %v461_v62 }
 0x22c   : > { %v483_v2 = vmax.f32 %v480_v1, 0.0 }
 0x22e   : > { %v484_v3 = vsel %vm890_vm6, %v483_v2, 0.0 }
 0x22f   : > { %485 = vrot.lane.b32.xlu2 %v484_v3, %s758_s28  ;;  %489 = vrot.lane.b32.xlu1 %v484_v3, %s759_s29  ;;  %v488_v8 = vpack.c.bf16 %v484_v3, %v484_v3  ;;  %s708_s28 = scalar_lea.hbm %s707_s13, 8 }
 0x230   : > { %p709_p11 = scmp.ne.s32.totalorder %s707_s13, %s708_s28  ;;  %p714_p1 = scmp.lt.s32.totalorder %s712_s25, %s708_s28 }
 0x231   : > { %v481_v4 = vpop.f32.mrf.mxu1  ;;  %v493_v11 = vunpack.c.l.b16 %v488_v8 }
 0x232   : > { %p710_p12 = pnand %p709_p11, %p851_p5  ;;  %p715_p2 = por %p714_p1, %p713_p0 }
 0x233   : > { %v494_v14 = vpack.c.b16 %v493_v11, %v493_v11 }
 0x234   : > { %p711_p13 = pneg %p710_p12 }
 0x236   : > { %p716_p3 = pnand %p715_p2, %p711_p13 }
 0x237   : > { %530 = vperm.xlu1 %691, %v527_v7  }
 0x289   : > { %v486_v9 = vpop.permute.xlu2 %485 }
 0x28a   : > { %v487_v0 = vpack.c.bf16 %v486_v9, %v486_v9 }
 0x28c   : > { %v497_v15 = vsel %vm388_vm1, %v487_v0, %v494_v14 }
 0x2a1   : > { %v490_v10 = vpop.permute.xlu1 %489 }
 0x2a2   : > { %v491_v12 = vpack.c.bf16 %v490_v10, %v490_v10 }
 0x2a4   : > { %v511_v13 = vsel %vm388_vm1, %v491_v12, 0 }
 0x2a5   : > { %519 = vmatpush.bf16.msra.mxu2 %v511_v13 }
 0x2a9   : > { %520 = vmatpush.bf16.msra.mxu2 %v497_v15  ;;  %v531_v19 = vpop.permute.xlu1 %530 }
 0x2aa   : > { %v549_v20 = vadd.f32 %v548_v17, %v531_v19 }
 0x2ac   : > { %638 = vmatmul.msk.bf16.vlgmr.msra.gmra.mxu2 %vm506_vm9, %v499_v16 }
 0x32f   : > { %v522_v22 = vpop.f32.mrf.mxu2 }
 0x330   : > { %v523_v23 = vadd.f32 %v522_v22, %v504_v21 }
 0x332   : > { %v552_v24 = vadd.f32 %v549_v20, %v523_v23 }
 0x334   : > { %v553_v25 = vmax.f32 %v552_v24, 0.0 }
 0x336   : > { %554 = vst [vmem:[%s323_s17] sm:$0xff] %v553_v25 }
 0x337   : > { %v524_v26 = vpop.f32.mrf.mxu2 }
 0x338   : > { %719 = shalt.err (!%p716_p3)
}
 0x339   : > { %644 = dma.vmem_to_hbm [thread:$0]  (%p851_p5), %s569_s21, 128, %s571_s22, %s556_s23  }
 0x33a PF: > { %p650_p4 = scmp.ge.s32.totalorder %s754_s12, 2  ;;  %s582_s24 = sand.u32 1, %s742_s30  }
 0x33b   : > { %s583_s27 = scalar_lea.sflag [#allocation3], %s582_s24 }
 0x33c   : > { %p647_p7 = pnand %p650_p4, %p855_p6 }
 0x33e   : > { %p648_p8 = pneg %p647_p7 }
 0x340   : > { %737 = dma.done.wait (%p648_p8), %s583_s27, 128  }
 0x341   : > { %739 = vsyncadd (%p648_p8), %s583_s27, 4294967168  ;;  %p19_p9 = scmp.ge.s32.totalorder %s838_s15, 4   ;;  %s969_s30 = smov %s746_s10 }
 0x342   : > { %s970_s10 = smov %s750_s11  ;;  %s971_s11 = smov %s849_s18 }
 0x343   : > { %s972_s12 = smov %s838_s15  ;;  %21 = sbr.rel (!%p19_p9) target bundleno = 3 (0x3), region = 92 }
 0x348   :  { %589 = vsyncpa [#allocation3], 1 }
 0x349   :  { %591 = vsyncpa [#allocation3 + $0x1], 1 }

</bundles_post_ra>
